<compile_context>
chip_gen: v7x
topology: tpu7x:2x2x1
jax: 0.10.0
libtpu: 0.0.40
codegen_flags: <defaults>
</compile_context>

<pallas_src>
import jax
import jax.numpy as jnp
from jax import lax
from jax.experimental import pallas as pl
from jax.experimental.pallas import tpu as pltpu


def _round_up(x, m):
    return ((x + m - 1) // m) * m


def _lrml_kernel(uid_ref, iid_ref,          # scalar prefetch (SMEM, int32 ids)
                 user_w_hbm, item_w_hbm,    # embedding tables, HBM (pl.ANY)
                 w_att_ref, mem_ref,        # (M, D) weights, resident in VMEM
                 out_ref,                   # (1, 1, TB) lane-dense output tile
                 u_buf, v_buf,              # (TB, D) VMEM gather buffers
                 u_sem, v_sem):             # DMA semaphores
    tb, d = u_buf.shape
    base = pl.program_id(0) * tb

    # ---- fused embedding gather: per-row DMA HBM -> VMEM ------------------
    def _issue(r, carry):
        uid = uid_ref[base + r]
        iid = iid_ref[base + r]
        pltpu.make_async_copy(user_w_hbm.at[pl.ds(uid, 1)],
                              u_buf.at[pl.ds(r, 1)], u_sem).start()
        pltpu.make_async_copy(item_w_hbm.at[pl.ds(iid, 1)],
                              v_buf.at[pl.ds(r, 1)], v_sem).start()
        return carry

    lax.fori_loop(0, tb, _issue, 0)

    def _drain(r, carry):
        # Source index is irrelevant for wait(); only the copy size matters.
        pltpu.make_async_copy(user_w_hbm.at[pl.ds(0, 1)],
                              u_buf.at[pl.ds(r, 1)], u_sem).wait()
        pltpu.make_async_copy(item_w_hbm.at[pl.ds(0, 1)],
                              v_buf.at[pl.ds(r, 1)], v_sem).wait()
        return carry

    lax.fori_loop(0, tb, _drain, 0)

    u_raw = u_buf[...].astype(jnp.float32)
    v_raw = v_buf[...].astype(jnp.float32)

    # ---- nn.Embedding(max_norm=1): rescale rows with L2 norm > 1 ----------
    # rsqrt runs on the EUP; min(1, rsqrt) also handles zero rows cleanly.
    u_scale = jnp.minimum(1.0, lax.rsqrt(jnp.sum(u_raw * u_raw, axis=1, keepdims=True)))
    v_scale = jnp.minimum(1.0, lax.rsqrt(jnp.sum(v_raw * v_raw, axis=1, keepdims=True)))
    u = u_raw * u_scale
    v = v_raw * v_scale

    # ---- joint embedding -> attention logits (contract D vs D, no .T) -----
    joint = u * v                                                   # (TB, D)
    logits = lax.dot_general(joint, w_att_ref[...].astype(jnp.float32),
                             dimension_numbers=(((1,), (1,)), ((), ())),
                             preferred_element_type=jnp.float32)    # (TB, M)
    logits = logits - jnp.max(logits, axis=1, keepdims=True)
    e = jnp.exp(logits)
    scores = e * pl.reciprocal(jnp.sum(e, axis=1, keepdims=True), approx=True)

    # ---- relation vector from the memory module ----------------------------
    relation = jnp.dot(scores, mem_ref[...].astype(jnp.float32),
                       preferred_element_type=jnp.float32)          # (TB, D)

    # ---- negative squared translation distance, lane-dense output ----------
    diff = u + relation - v
    sq = diff * diff
    ones_row = jnp.ones((1, d), jnp.float32)
    # Row-sum via a ones-row matmul -> result already laid out as (1, TB).
    neg_dist = -lax.dot_general(ones_row, sq,
                                dimension_numbers=(((1,), (1,)), ((), ())),
                                preferred_element_type=jnp.float32)  # (1, TB)
    out_ref[...] = neg_dist.reshape((1, 1, tb))


def lrml_forward(user_ids, item_ids, user_weight, item_weight,
                 attention_weight, memory_matrix, *, tile_b=256):
    """LRML forward: fused gather + renorm + attention softmax + distance."""
    B = user_ids.shape[0]
    M, D = memory_matrix.shape

    # Batch tile: multiple of 8 sublanes; tile_b also bounds VMEM scratch and
    # the number of in-flight gather DMAs per grid step.
    TB = _round_up(min(tile_b, max(8, _round_up(B, 8))), 8)
    B_pad = _round_up(B, TB)
    G = B_pad // TB

    uid = jnp.zeros((B_pad,), jnp.int32).at[:B].set(user_ids.astype(jnp.int32))
    iid = jnp.zeros((B_pad,), jnp.int32).at[:B].set(item_ids.astype(jnp.int32))

    grid_spec = pltpu.PrefetchScalarGridSpec(
        num_scalar_prefetch=2,
        grid=(G,),
        in_specs=[
            pl.BlockSpec(memory_space=pl.ANY),                   # user table (HBM)
            pl.BlockSpec(memory_space=pl.ANY),                   # item table (HBM)
            pl.BlockSpec((M, D), lambda i, uids, iids: (0, 0)),  # attention weight
            pl.BlockSpec((M, D), lambda i, uids, iids: (0, 0)),  # memory matrix
        ],
        out_specs=pl.BlockSpec((1, 1, TB), lambda i, uids, iids: (i, 0, 0)),
        scratch_shapes=[
            pltpu.VMEM((TB, D), user_weight.dtype),
            pltpu.VMEM((TB, D), item_weight.dtype),
            pltpu.SemaphoreType.DMA(()),
            pltpu.SemaphoreType.DMA(()),
        ],
    )

    out = pl.pallas_call(
        _lrml_kernel,
        out_shape=jax.ShapeDtypeStruct((G, 1, TB), jnp.float32),
        grid_spec=grid_spec,
        compiler_params=pltpu.CompilerParams(
            dimension_semantics=("parallel",),
        ),
    )(uid, iid, user_weight, item_weight, attention_weight, memory_matrix)

    return out.reshape(B_pad)[:B]   # (B,)


def _reference(user_ids, item_ids, user_weight, item_weight,
               attention_weight, memory_matrix):
    u = jnp.take(user_weight, user_ids, axis=0)
    v = jnp.take(item_weight, item_ids, axis=0)
    un = jnp.linalg.norm(u, axis=1, keepdims=True)
    vn = jnp.linalg.norm(v, axis=1, keepdims=True)
    u = u * jnp.where(un > 1.0, 1.0 / un, 1.0)
    v = v * jnp.where(vn > 1.0, 1.0 / vn, 1.0)
    joint = u * v
    scores = jax.nn.softmax(joint @ attention_weight.T, axis=1)
    relation = scores @ memory_matrix
    return -jnp.sum((u + relation - v) ** 2, axis=1)


if __name__ == "__main__":
    num_users, num_items = 16, 24
    embedding_dim, memory_dim = 32, 10
    batch = 20

    key = jax.random.PRNGKey(0)
    k_u, k_i, k_m, k_a, k_uid, k_iid = jax.random.split(key, 6)

    # Deterministic parameter initialization (shapes match module __init__).
    user_weight = jax.random.normal(k_u, (num_users, embedding_dim), jnp.float32)
    item_weight = jax.random.normal(k_i, (num_items, embedding_dim), jnp.float32)
    memory_matrix = (jax.random.normal(k_m, (memory_dim, embedding_dim), jnp.float32)
                     / embedding_dim ** 0.5)
    # nn.Linear(embedding_dim, memory_dim, bias=False): U(-1/sqrt(D), 1/sqrt(D))
    bound = 1.0 / embedding_dim ** 0.5
    attention_weight = jax.random.uniform(
        k_a, (memory_dim, embedding_dim), jnp.float32, -bound, bound)

    user_ids = jax.random.randint(k_uid, (batch,), 0, num_users)
    item_ids = jax.random.randint(k_iid, (batch,), 0, num_items)

    ref = _reference(user_ids, item_ids, user_weight, item_weight,
                     attention_weight, memory_matrix)

    # Exercise both the multi-tile grid path (TB=8 -> 3 tiles, padded batch)
    # and the single-tile path (default tile size).
    for tb in (8, 256):
        out = lrml_forward(user_ids, item_ids, user_weight, item_weight,
                           attention_weight, memory_matrix, tile_b=tb)
        out = jax.block_until_ready(out)
        assert out.shape == (batch,)
        # Tolerance relaxed slightly from 1e-4: the softmax denominator uses
        # the approximate EUP reciprocal (pl.reciprocal(approx=True)).
        assert jnp.allclose(out, ref, atol=1e-3, rtol=1e-3), (tb, out, ref)

    print("KERNEL_OK")
</pallas_src>

<mosaic_0001>
module attributes {stable_mosaic.version = 11 : i64} {
  func.func @_lrml_kernel(%arg0: i32, %arg1: memref<24xi32, #tpu.memory_space<smem>>, %arg2: memref<24xi32, #tpu.memory_space<smem>>, %arg3: memref<16x32xf32, #tpu.memory_space<any>>, %arg4: memref<24x32xf32, #tpu.memory_space<any>>, %arg5: memref<10x32xf32, #tpu.memory_space<vmem>>, %arg6: memref<10x32xf32, #tpu.memory_space<vmem>>, %arg7: memref<1x1x8xf32, #tpu.memory_space<vmem>>, %arg8: memref<8x32xf32, #tpu.memory_space<vmem>>, %arg9: memref<8x32xf32, #tpu.memory_space<vmem>>, %arg10: memref<!tpu.dma_semaphore, #tpu.memory_space<semaphore_mem>>, %arg11: memref<!tpu.dma_semaphore, #tpu.memory_space<semaphore_mem>>) attributes {dimension_semantics = [#tpu.dimension_semantics<parallel>], iteration_bounds = array<i64: 3>, scalar_prefetch = 2 : i64, scratch_operands = 4 : i64, tpu.core_type = #tpu.core_type<tc>, window_params = [{}, {}, {pipeline_mode = #tpu.pipeline_mode<synchronous>, transform_indices = @transform_2, window_bounds = array<i64: 10, 32>}, {pipeline_mode = #tpu.pipeline_mode<synchronous>, transform_indices = @transform_3, window_bounds = array<i64: 10, 32>}, {transform_indices = @transform_4, window_bounds = array<i64: 1, 1, 8>}]} {
    %c8_i32 = arith.constant 8 : i32
    %0 = arith.muli %arg0, %c8_i32 : i32
    %c0_i32 = arith.constant 0 : i32
    %c8_i32_0 = arith.constant 8 : i32
    %1 = arith.addi %c0_i32, %c8_i32_0 : i32
    %c1_i32 = arith.constant 1 : i32
    scf.for %arg12 = %c0_i32 to %1 step %c1_i32  : i32 {
      %45 = arith.addi %0, %arg12 : i32
      %46 = arith.index_cast %45 : i32 to index
      %47 = memref.load %arg1[%46] : memref<24xi32, #tpu.memory_space<smem>>
      %48 = arith.addi %0, %arg12 : i32
      %49 = arith.index_cast %48 : i32 to index
      %50 = memref.load %arg2[%49] : memref<24xi32, #tpu.memory_space<smem>>
      %c0_i32_26 = arith.constant 0 : i32
      %51 = tpu.memref_slice %arg3[%47, %c0_i32_26] : memref<16x32xf32, #tpu.memory_space<any>> -> memref<1x32xf32, #tpu.memory_space<any>>
      %c0_i32_27 = arith.constant 0 : i32
      %52 = tpu.memref_slice %arg8[%arg12, %c0_i32_27] : memref<8x32xf32, #tpu.memory_space<vmem>> -> memref<1x32xf32, #tpu.memory_space<vmem>>
      tpu.enqueue_dma source(%51 : memref<1x32xf32, #tpu.memory_space<any>>) target(%52 : memref<1x32xf32, #tpu.memory_space<vmem>>) target_semaphore(%arg10 : memref<!tpu.dma_semaphore, #tpu.memory_space<semaphore_mem>>)
      %c0_i32_28 = arith.constant 0 : i32
      %53 = tpu.memref_slice %arg4[%50, %c0_i32_28] : memref<24x32xf32, #tpu.memory_space<any>> -> memref<1x32xf32, #tpu.memory_space<any>>
      %c0_i32_29 = arith.constant 0 : i32
      %54 = tpu.memref_slice %arg9[%arg12, %c0_i32_29] : memref<8x32xf32, #tpu.memory_space<vmem>> -> memref<1x32xf32, #tpu.memory_space<vmem>>
      tpu.enqueue_dma source(%53 : memref<1x32xf32, #tpu.memory_space<any>>) target(%54 : memref<1x32xf32, #tpu.memory_space<vmem>>) target_semaphore(%arg11 : memref<!tpu.dma_semaphore, #tpu.memory_space<semaphore_mem>>)
    }
    %c8_i32_1 = arith.constant 8 : i32
    %c0_i32_2 = arith.constant 0 : i32
    %c8_i32_3 = arith.constant 8 : i32
    %2 = arith.addi %c0_i32_2, %c8_i32_3 : i32
    %c1_i32_4 = arith.constant 1 : i32
    scf.for %arg12 = %c0_i32_2 to %2 step %c1_i32_4  : i32 {
      %c0_i32_26 = arith.constant 0 : i32
      %c0_i32_27 = arith.constant 0 : i32
      %45 = tpu.memref_slice %arg3[%c0_i32_26, %c0_i32_27] : memref<16x32xf32, #tpu.memory_space<any>> -> memref<1x32xf32, #tpu.memory_space<any>>
      %c0_i32_28 = arith.constant 0 : i32
      %46 = tpu.memref_slice %arg8[%arg12, %c0_i32_28] : memref<8x32xf32, #tpu.memory_space<vmem>> -> memref<1x32xf32, #tpu.memory_space<vmem>>
      tpu.wait_dma2 semaphore(%arg10 : memref<!tpu.dma_semaphore, #tpu.memory_space<semaphore_mem>>) src(%45 : memref<1x32xf32, #tpu.memory_space<any>>) dst(%46 : memref<1x32xf32, #tpu.memory_space<vmem>>)
      %c0_i32_29 = arith.constant 0 : i32
      %c0_i32_30 = arith.constant 0 : i32
      %47 = tpu.memref_slice %arg4[%c0_i32_29, %c0_i32_30] : memref<24x32xf32, #tpu.memory_space<any>> -> memref<1x32xf32, #tpu.memory_space<any>>
      %c0_i32_31 = arith.constant 0 : i32
      %48 = tpu.memref_slice %arg9[%arg12, %c0_i32_31] : memref<8x32xf32, #tpu.memory_space<vmem>> -> memref<1x32xf32, #tpu.memory_space<vmem>>
      tpu.wait_dma2 semaphore(%arg11 : memref<!tpu.dma_semaphore, #tpu.memory_space<semaphore_mem>>) src(%47 : memref<1x32xf32, #tpu.memory_space<any>>) dst(%48 : memref<1x32xf32, #tpu.memory_space<vmem>>)
    }
    %c8_i32_5 = arith.constant 8 : i32
    %c0 = arith.constant 0 : index
    %c0_6 = arith.constant 0 : index
    %3 = vector.load %arg8[%c0, %c0_6] : memref<8x32xf32, #tpu.memory_space<vmem>>, vector<8x32xf32>
    %c0_7 = arith.constant 0 : index
    %c0_8 = arith.constant 0 : index
    %4 = vector.load %arg9[%c0_7, %c0_8] : memref<8x32xf32, #tpu.memory_space<vmem>>, vector<8x32xf32>
    %5 = arith.mulf %3, %3 : vector<8x32xf32>
    %cst = arith.constant dense<0.000000e+00> : vector<8xf32>
    %6 = vector.multi_reduction <add>, %5, %cst [1] : vector<8x32xf32> to vector<8xf32>
    %7 = vector.shape_cast %6 : vector<8xf32> to vector<8x1xf32>
    %8 = math.rsqrt %7 : vector<8x1xf32>
    %cst_9 = arith.constant 1.000000e+00 : f32
    %9 = vector.broadcast %cst_9 : f32 to vector<8x1xf32>
    %10 = arith.minimumf %9, %8 : vector<8x1xf32>
    %11 = arith.mulf %4, %4 : vector<8x32xf32>
    %cst_10 = arith.constant dense<0.000000e+00> : vector<8xf32>
    %12 = vector.multi_reduction <add>, %11, %cst_10 [1] : vector<8x32xf32> to vector<8xf32>
    %13 = vector.shape_cast %12 : vector<8xf32> to vector<8x1xf32>
    %14 = math.rsqrt %13 : vector<8x1xf32>
    %cst_11 = arith.constant 1.000000e+00 : f32
    %15 = vector.broadcast %cst_11 : f32 to vector<8x1xf32>
    %16 = arith.minimumf %15, %14 : vector<8x1xf32>
    %17 = vector.broadcast %10 : vector<8x1xf32> to vector<8x32xf32>
    %18 = arith.mulf %3, %17 : vector<8x32xf32>
    %19 = vector.broadcast %16 : vector<8x1xf32> to vector<8x32xf32>
    %20 = arith.mulf %4, %19 : vector<8x32xf32>
    %21 = arith.mulf %18, %20 : vector<8x32xf32>
    %c0_12 = arith.constant 0 : index
    %c0_13 = arith.constant 0 : index
    %22 = vector.load %arg5[%c0_12, %c0_13] : memref<10x32xf32, #tpu.memory_space<vmem>>, vector<10x32xf32>
    %cst_14 = arith.constant dense<0.000000e+00> : vector<8x10xf32>
    %23 = tpu.matmul %21, %22, %cst_14 {dimension_numbers = #tpu.dot_dimension_numbers<[1], [1], [0], [0], [0, 0, 1, 0], [], []>} : vector<8x32xf32>, vector<10x32xf32>, vector<8x10xf32> -> vector<8x10xf32>
    %cst_15 = arith.constant dense<0xFF800000> : vector<8xf32>
    %24 = vector.multi_reduction <maximumf>, %23, %cst_15 [1] : vector<8x10xf32> to vector<8xf32>
    %25 = vector.shape_cast %24 : vector<8xf32> to vector<8x1xf32>
    %26 = vector.broadcast %25 : vector<8x1xf32> to vector<8x10xf32>
    %27 = arith.subf %23, %26 : vector<8x10xf32>
    %28 = math.exp %27 : vector<8x10xf32>
    %cst_16 = arith.constant dense<0.000000e+00> : vector<8xf32>
    %29 = vector.multi_reduction <add>, %28, %cst_16 [1] : vector<8x10xf32> to vector<8xf32>
    %30 = vector.shape_cast %29 : vector<8xf32> to vector<8x1xf32>
    %31 = tpu.reciprocal %30 {approx = true} : vector<8x1xf32> -> vector<8x1xf32>
    %32 = vector.broadcast %31 : vector<8x1xf32> to vector<8x10xf32>
    %33 = arith.mulf %28, %32 : vector<8x10xf32>
    %c0_17 = arith.constant 0 : index
    %c0_18 = arith.constant 0 : index
    %34 = vector.load %arg6[%c0_17, %c0_18] : memref<10x32xf32, #tpu.memory_space<vmem>>, vector<10x32xf32>
    %cst_19 = arith.constant dense<0.000000e+00> : vector<8x32xf32>
    %35 = tpu.matmul %33, %34, %cst_19 {dimension_numbers = #tpu.dot_dimension_numbers<[1], [0], [0], [1], [0, 0, 1, 1], [], []>} : vector<8x10xf32>, vector<10x32xf32>, vector<8x32xf32> -> vector<8x32xf32>
    %36 = arith.addf %18, %35 : vector<8x32xf32>
    %37 = arith.subf %36, %20 : vector<8x32xf32>
    %38 = arith.mulf %37, %37 : vector<8x32xf32>
    %cst_20 = arith.constant 1.000000e+00 : f32
    %39 = vector.broadcast %cst_20 : f32 to vector<1x32xf32>
    %cst_21 = arith.constant dense<0.000000e+00> : vector<1x8xf32>
    %40 = tpu.matmul %39, %38, %cst_21 {dimension_numbers = #tpu.dot_dimension_numbers<[1], [1], [0], [0], [0, 0, 1, 0], [], []>} : vector<1x32xf32>, vector<8x32xf32>, vector<1x8xf32> -> vector<1x8xf32>
    %cst_22 = arith.constant 0.000000e+00 : f32
    %41 = vector.broadcast %cst_22 : f32 to vector<1x8xf32>
    %42 = arith.subf %41, %40 : vector<1x8xf32>
    %43 = vector.shape_cast %42 : vector<1x8xf32> to vector<1x1x8xf32>
    %c0_23 = arith.constant 0 : index
    %c0_24 = arith.constant 0 : index
    %c0_25 = arith.constant 0 : index
    %44 = vector.load %arg7[%c0_23, %c0_24, %c0_25] : memref<1x1x8xf32, #tpu.memory_space<vmem>>, vector<1x1x8xf32>
    tpu.vector_store %arg7[%c0_23, %c0_24, %c0_25], %43 {strides = array<i32>} : memref<1x1x8xf32, #tpu.memory_space<vmem>>, vector<1x1x8xf32>,
    return
  }
  func.func @transform_2(%arg0: i32, %arg1: memref<24xi32, #tpu.memory_space<smem>>, %arg2: memref<24xi32, #tpu.memory_space<smem>>) -> (i32, i32) {
    %c0_i32 = arith.constant 0 : i32
    %c0_i32_0 = arith.constant 0 : i32
    %c0_i32_1 = arith.constant 0 : i32
    return %c0_i32, %c0_i32_0 : i32, i32
  }
  func.func @transform_3(%arg0: i32, %arg1: memref<24xi32, #tpu.memory_space<smem>>, %arg2: memref<24xi32, #tpu.memory_space<smem>>) -> (i32, i32) {
    %c0_i32 = arith.constant 0 : i32
    %c0_i32_0 = arith.constant 0 : i32
    %c0_i32_1 = arith.constant 0 : i32
    return %c0_i32, %c0_i32_0 : i32, i32
  }
  func.func @transform_4(%arg0: i32, %arg1: memref<24xi32, #tpu.memory_space<smem>>, %arg2: memref<24xi32, #tpu.memory_space<smem>>) -> (i32, i32, i32) {
    %c0_i32 = arith.constant 0 : i32
    %c0_i32_0 = arith.constant 0 : i32
    %c0_i32_1 = arith.constant 0 : i32
    return %arg0, %c0_i32, %c0_i32_0 : i32, i32, i32
  }
}

</mosaic_0001>

<bundles_post_ra>
// kernel: tpu_custom_call.1
= control target key start
LH: loop header
LB: loop body
LE: loop exit
PB: predicated region body
PF: predicated region fallthrough
CT: control target
= control target key end

     0   :  { %s1152_s0 = inlined_call_operand.hbm [shape: s32[24], index: 0, kind: input, shape index: {}]   ;;  %s1153_s2 = inlined_call_operand.hbm [shape: f32[16,32], index: 2, kind: input, shape index: {}]   ;;  %s1154_s3 = inlined_call_operand.hbm [shape: f32[24,32], index: 3, kind: input, shape index: {}]   ;;  %s1155_s4 = inlined_call_operand.hbm [shape: f32[10,32], index: 4, kind: input, shape index: {}]   ;;  %s1156_s5 = inlined_call_operand.vmem [shape: f32[10,32], index: 5, kind: input, shape index: {}]   ;;  %s1157_s6 = inlined_call_operand.hbm [shape: f32[3,1,8], index: 6, kind: output, shape index: {}]   ;;  %s1158_s1 = inlined_call_operand.vmem [shape: s32[24], index: 1, kind: input, shape index: {}]  }
   0x1   :  { %1163 = sst [smem:[#allocation25_spill]] %s1155_s4  ;;  %s703_s23 = scalar_lea.hbm %s1152_s0, 16 }
   0x2   :  { %p704_p0 = scmp.ne.s32.totalorder %s1152_s0, %s703_s23  ;;  %p707_p1 = scmp.lt.u32.totalorder %s703_s23, %s1152_s0 }
   0x4   :  { %p709_p2 = pnand %p707_p1, %p704_p0 }
   0x6   :  { %712 = shalt.err (!%p709_p2)  }
   0x7   :  { %s891_s28 = smov [#allocation7]   ;;  %s13_s9 = sshll.u32 %s1158_s1, 4  ;;  %s14_s9 = int_to_ptr.vmem [resolvable:$true] %s13_s9 }
   0x8   :  { %12 = dma.hbm_to_smem %s1152_s0, 16, %s891_s28, [#allocation6] }
   0x9   :  { %s713_s10 = scalar_lea.vmem %s14_s9, 16  ;;  %p718_p4 = scmp.lt.s32.totalorder %s14_s9, %s14_s9 }
   0xa   :  { %p714_p3 = scmp.ne.s32.totalorder %s14_s9, %s713_s10  ;;  %p719_p5 = scmp.lt.s32.totalorder %s713_s10, %s713_s10 }
   0xc   :  { %p720_p6 = por %p719_p5, %p718_p4 }
   0xe   :  { %p721_p7 = pnand %p720_p6, %p714_p3 }
  0x10   :  { %724 = shalt.err (!%p721_p7)  }
  0x11   :  { %s892_s11 = smov [#allocation8]  }
  0x12   :  { %16 = dma.vmem_to_smem %s14_s9, 16, %s892_s11, [#allocation6] }
  0x13   :  { %853 = dma.done.wait [#allocation6], 32 }
  0x14   :  { %854 = vsyncadd [#allocation6], 4294967264 }
  0x15   :  { %18 = sfence }
  0x16   :  { %19 = vsyncpa [#allocation10], 0 }
  0x17   :  { %20 = vsyncpa [#allocation11], 0 }
  0x18   :  { %22 = vsyncpa [#allocation11 + $0x1], 0  ;;  %s954_s0 = smov 0   ;;  %s956_s12 = smov 0  }
  0x19   :  { %s958_s1 = smov 0   ;;  %s960_s13 = smov 0  }
  0x1a LB: > { %s975_s14 = sadd.s32 4294967295, %s881_s13   ;;  %s565_s15 = sadd.s32 4294967294, %s881_s13   ;;  %s881_s13 = sphi %s960_s13, %s1181_s13   ;;  %s877_s1 = sphi %s958_s1, %s1180_s1   ;;  %s873_s12 = sphi %s956_s12, %s1179_s12   ;;  %s869_s0 = sphi %s954_s0, %s1178_s0  }
  0x1b   : > { %s979_s16 = sadd.s32 1, %s881_s13   ;;  %s77_s17 = sadd.s32 1, %s877_s1 }
  0x1c   : > { %s74_s18 = ssub.s32 %s881_s13, %s979_s16  ;;  %p87_p8 = scmp.ne.s32.totalorder %s877_s1, %s873_s12 }
  0x1d   : > { %p75_p9 = scmp.eq.s32.totalorder %s74_s18, 0  ;;  %p88_p10 = scmp.eq.s32.totalorder %s975_s14, 2 }
  0x1e   : > { %p93_p11 = scmp.ne.s32.totalorder %s873_s12, %s869_s0  ;;  %p94_p12 = scmp.eq.s32.totalorder %s565_s15, 2 }
  0x1f   : > { %s990_s19 = scalar_select %p75_p9, %s877_s1, %s77_s17  }
  0x20   : > { %p992_p13 = por %p88_p10, %p87_p8  ;;  %p996_p0 = por %p94_p12, %p93_p11 }
  0x21   : > { %1164 = sst [smem:[#allocation24_spill]] %s990_s19  ;;  %p566_p1 = scmp.ge.s32.totalorder %s881_s13, 1 }
  0x22   : > { %s1165_s20 = scalar_select %p992_p13, 1, 0 }
  0x23   : > { %s1166_s21 = scalar_select %p996_p0, 1, 0 }
  0x24   : > { %p101_p2 = scmp.lt.s32.totalorder %s881_s13, 4  ;;  %p1159_p3 = scmp.eq.s32.totalorder %s975_s14, 0 }
  0x25   : > { %s893_s23 = smov [#allocation9]   ;;  %s1169_s4 = sld [smem:[#allocation25_spill]] }
  0x26   : > { %p1003_p4 = pnand %p566_p1, %p101_p2  ;;  %s113_s24 = sshll.u32 %s893_s23, 4  ;;  %s114_s24 = int_to_ptr.vmem [resolvable:$true] %s113_s24 }
  0x28   : > { %s1167_s22 = scalar_select %p1003_p4, 1, 0 }
  0x29   : > { %p626_p5 = pneg %p1003_p4 }
  0x2b   : > { %p1011_p6 = pnand %p1159_p3, %p626_p5  ;;  %s725_s28 = scalar_lea.hbm %s1169_s4, 256 }
  0x2c   : > { %p726_p7 = scmp.ne.s32.totalorder %s1169_s4, %s725_s28  ;;  %p732_p11 = scmp.lt.u32.totalorder %s725_s28, %s1169_s4 }
  0x2d   : > { %p727_p8 = pneg %p1011_p6 }
  0x2f   : > { %p728_p9 = pnand %p727_p8, %p726_p7 }
  0x31   : > { %p729_p10 = pneg %p728_p9 }
  0x33   : > { %p734_p12 = pnand %p732_p11, %p729_p10 }
  0x35   : > { %737 = shalt.err (!%p734_p12)
}
  0x36   : > { %s738_s9 = scalar_lea.vmem %s114_s24, 256  ;;  %p746_p3 = scmp.lt.s32.totalorder %s114_s24, %s114_s24 }
  0x37   : > { %p739_p1 = scmp.ne.s32.totalorder %s114_s24, %s738_s9  ;;  %p747_p0 = scmp.lt.s32.totalorder %s738_s9, %s738_s9 }
  0x39   : > { %p741_p2 = pnand %p739_p1, %p727_p8  ;;  %p748_p13 = por %p747_p0, %p746_p3 }
  0x3b   : > { %p742_p5 = pneg %p741_p2 }
  0x3d   : > { %p749_p4 = pnand %p748_p13, %p742_p5 }
  0x3f   : > { %752 = shalt.err (!%p749_p4)
}
  0x40   : > { %s894_s10 = smov 128   ;;  %s895_s11 = smov 8  }
  0x41   : > { %629 = dma.hbm_to_vmem [thread:$0]  (!%p1011_p6), %s1169_s4, 256, %s114_s24, [#allocation10], %s894_s10, %s894_s10, %s895_s11  }
  0x42   : > { %p1170_p7 = scmp.ne.s32.totalorder %s1167_s22, 0 }
  0x43   : > { %p1171_p9 = scmp.eq.s32.totalorder (!%p1170_p7), %s975_s14, 0 }
  0x44   : > { %132 = sbr.rel (%p1170_p7) target bundleno = 1288 (0x508), region = 28 }
  0x4b   : > { %856 = dma.done.wait (%p1171_p9), [#allocation10], 256   ;;  %p1172_p8 = pmov %p1171_p9 }
  0x4c   : > { %s1162_s18 = sand.u32 1, %s873_s12   ;;  %s1043_s26 = smov 0  }
  0x4d   : > { %858 = vsyncadd (%p1172_p8), [#allocation10], 4294967040  ;;  %s1041_s25 = scalar_lea.vmem [#allocation12], %s1162_s18 }
  0x4e LB: >> { %s1173_s23 = sshll.u32 %s975_s14, 3  ;;  %s160_s28 = scalar_lea.vmem [#allocation2], %s885_s26  ;;  %s885_s26 = sphi %s1043_s26, %s154_s26  }
  0x4f   : >> { %s155_s22 = sadd.s32 %s885_s26, %s1173_s23  ;;  %s168_s29 = sshll.u32 %s160_s28, 4  ;;  %s169_s29 = int_to_ptr.vmem [resolvable:$true] %s168_s29 }
  0x50   : >> { %s156_s24 = sld [smem:[#allocation7 + %s155_s22]]  ;;  %s174_s30 = scalar_lea.vmem [#allocation3], %s885_s26 }
  0x51   : >> { %s1051_s27 = sld [smem:[#allocation8 + %s155_s22]]  ;;  %s182_s7 = sshll.u32 %s174_s30, 4  ;;  %s1055_s7 = int_to_ptr.vmem [resolvable:$true] %s182_s7 }
  0x52   : >> { %s755_s22 = scalar_lea.hbm %s1153_s2, 256 }
  0x56   : >> { %s571_s8 = sshll.u32 %s156_s24, 4 }
  0x57   : >> { %s159_s11 = scalar_lea.hbm %s1153_s2, %s571_s8  ;;  %s572_s15 = sshll.u32 %s1051_s27, 4 }
  0x58   : >> { %s753_s17 = scalar_lea.hbm %s159_s11, 16  ;;  %p756_p0 = scmp.lt.u32.totalorder %s159_s11, %s1153_s2 }
  0x59   : >> { %p754_p13 = scmp.ne.s32.totalorder %s159_s11, %s753_s17  ;;  %p757_p3 = scmp.lt.u32.totalorder %s755_s22, %s753_s17 }
  0x5a   : >> { %p759_p6 = scmp.lt.u32.totalorder %s753_s17, %s159_s11 }
  0x5b   : >> { %p758_p4 = por %p757_p3, %p756_p0 }
  0x5d   : >> { %p760_p10 = por %p759_p6, %p758_p4 }
  0x5f   : >> { %p761_p11 = pnand %p760_p10, %p754_p13 }
  0x61   : >> { %764 = shalt.err (!%p761_p11)  }
  0x62   : >> { %s765_s24 = scalar_lea.vmem %s169_s29, 16  ;;  %s896_s28 = smov [#allocation2]  }
  0x63   : >> { %p766_p12 = scmp.ne.s32.totalorder %s169_s29, %s765_s24  ;;  %s767_s27 = sshll.u32 %s896_s28, 4  ;;  %s768_s27 = int_to_ptr.vmem [resolvable:$false] %s767_s27 }
  0x64   : >> { %s769_s30 = scalar_lea.vmem %s768_s27, 128  ;;  %p770_p1 = scmp.lt.s32.totalorder %s169_s29, %s768_s27 }
  0x65   : >> { %p771_p2 = scmp.lt.s32.totalorder %s769_s30, %s765_s24 }
  0x67   : >> { %p772_p5 = por %p771_p2, %p770_p1 }
  0x69   : >> { %p773_p7 = pnand %p772_p5, %p766_p12 }
  0x6b   : >> { %776 = shalt.err (!%p773_p7)  }
  0x6c   : >> { %171 = dma.hbm_to_vmem [thread:$0]  %s159_s11, 16, %s169_s29, [#allocation4] }
  0x6d   : >> { %s173_s18 = scalar_lea.hbm %s1154_s3, %s572_s15  ;;  %s779_s10 = scalar_lea.hbm %s1154_s3, 384 }
  0x6e   : >> { %s777_s23 = scalar_lea.hbm %s173_s18, 16  ;;  %p780_p8 = scmp.lt.u32.totalorder %s173_s18, %s1154_s3 }
  0x6f   : >> { %p778_p9 = scmp.ne.s32.totalorder %s173_s18, %s777_s23  ;;  %p781_p13 = scmp.lt.u32.totalorder %s779_s10, %s777_s23 }
  0x70   : >> { %p783_p3 = scmp.lt.u32.totalorder %s777_s23, %s173_s18 }
  0x71   : >> { %p782_p0 = por %p781_p13, %p780_p8 }
  0x73   : >> { %p784_p4 = por %p783_p3, %p782_p0 }
  0x75   : >> { %p785_p6 = pnand %p784_p4, %p778_p9 }
  0x77   : >> { %788 = shalt.err (!%p785_p6)  }
  0x78   : >> { %s789_s29 = scalar_lea.vmem %s1055_s7, 16  ;;  %s897_s11 = smov [#allocation3]  }
  0x79   : >> { %p790_p10 = scmp.ne.s32.totalorder %s1055_s7, %s789_s29  ;;  %s791_s15 = sshll.u32 %s897_s11, 4  ;;  %s792_s15 = int_to_ptr.vmem [resolvable:$false] %s791_s15 }
  0x7a   : >> { %s793_s24 = scalar_lea.vmem %s792_s15, 128  ;;  %p794_p11 = scmp.lt.s32.totalorder %s1055_s7, %s792_s15 }
  0x7b   : >> { %p795_p12 = scmp.lt.s32.totalorder %s793_s24, %s789_s29 }
  0x7d   : >> { %p796_p1 = por %p795_p12, %p794_p11 }
  0x7f   : >> { %p797_p2 = pnand %p796_p1, %p790_p10 }
  0x81   : >> { %800 = shalt.err (!%p797_p2)  }
  0x82   : >> { %185 = dma.hbm_to_vmem [thread:$0]  %s173_s18, 16, %s1055_s7, [#allocation5] }
  0x83   : >> { %s154_s26 = sadd.s32 1, %s885_s26  }
  0x84   : >> { %p151_p5 = scmp.ge.s32.totalorder %s154_s26, 8  }
  0x85   : > { %s887_s28 = smov (%p151_p5), 0  }
  0x86   : > { %153 = sbr.rel (!%p151_p5) target bundleno = 78 (0x4e), region = 91 }
  0x8d LB: >> { %859 = dma.done.wait [#allocation4], 16  ;;  %s889_s28 = sphi %s887_s28, %s191_s28  }
  0x8e   : >> { %860 = vsyncadd [#allocation4], 4294967280 }
  0x8f   : >> { %861 = dma.done.wait [#allocation5], 16 }
  0x90   : >> { %862 = vsyncadd [#allocation5], 4294967280  ;;  %s191_s28 = sadd.s32 1, %s889_s28  }
  0x91   : >> { %p188_p7 = scmp.ge.s32.totalorder %s191_s28, 8  }
  0x92   : > { %v197_v0 = vld [vmem:[#allocation2] sm:$0xff] (%p188_p7)  ;;  %vm200_vm0 = vcmask (%p188_p7), 261120   ;;  %v198_v1 = vld [vmem:[#allocation3] sm:$0xff] (%p188_p7)  ;;  %v215_v6 = vld [vmem:[#allocation9] sm:$0xff] (%p188_p7)  ;;  %v898_v9 = vmov (%p188_p7), 0.0|0.0   ;;  %vm899_vm2 = vmmov (%p188_p7), 0  }
  0x93   : > { %190 = sbr.rel (!%p188_p7) target bundleno = 141 (0x8d), region = 102  ;;  %v199_v2 = vmul.f32 (%p188_p7), %v197_v0, %v197_v0  ;;  %v206_v3 = vmul.f32 (%p188_p7), %v198_v1, %v198_v1  ;;  %v216_v7 = vld [vmem:[#allocation9 + $0x8] sm:$0x3] (%p188_p7)  ;;  %612 = vmatprep.subr.bf16.mxu0 (%p188_p7), %v898_v9  ;;  %vm614_vm1 = vmpackc.low (%p188_p7), %vm200_vm0, %vm200_vm0  ;;  %616 = vmatprep.subr.bf16.mxu1 (%p188_p7), %v898_v9  ;;  %v900_v10 = vmov (%p188_p7), 0.0   ;;  %vm296_vm3 = vcmask (%p188_p7), 80896   ;;  %v308_v28 = vld [vmem:[%s1156_s5] sm:$0xff] (%p188_p7) }
  0x94   : > { %v613_v8 = vpack.c.bf16 (%p188_p7), %v216_v7, %v215_v6  ;;  %597 = vmatprep.mubr.msk.f32.mxu0 (%p188_p7), %vm899_vm2, %v900_v10  ;;  %604 = vmatprep.mubr.msk.f32.mxu1 (%p188_p7), %vm899_vm2, %v900_v10  ;;  %v309_v29 = vld [vmem:[%s1156_s5 + $0x8] sm:$0x3] (%p188_p7)  ;;  %vm313_vm4 = vcmask (%p188_p7), 1041408   ;;  %vm901_vm5 = vmmov (%p188_p7), 1   ;;  %v902_v39 = vmov (%p188_p7), 1.0   ;;  %s580_s4 = sshll.u32 (%p188_p7), %s975_s14, 4 }
  0x95   : > { %v201_v4 = vsel (%p188_p7), %vm200_vm0, %v199_v2, 0.0  ;;  %v207_v5 = vsel (%p188_p7), %vm200_vm0, %v206_v3, 0.0  ;;  %v617_v30 = vpack.c.bf16 (%p188_p7), %v309_v29, %v308_v28  ;;  %vm618_vm6 = vmpackc.low (%p188_p7), %vm313_vm4, %vm901_vm5  ;;  %s482_s19 = sshll.u32 (%p188_p7), %s1041_s25, 4  ;;  %vm467_vm7 = vcmask (%p188_p7), 57344   ;;  %s1107_s8 = scalar_lea.hbm (%p188_p7), %s1157_s6, %s580_s4  ;;  %s1109_s19 = int_to_ptr.vmem [resolvable:$true] %s482_s19 }
  0x96   : > { %202 = vadd.xlane.f32.xlu0 (%p188_p7), %v201_v4  ;;  %615 = vmatpush3.bf16.xpose.msk.msra.mxu0 (%p188_p7), %vm614_vm1, %v613_v8  ;;  %s1174_s9 = sand.u32 (%p188_p7), 1, %s873_s12   ;;  %s801_s17 = scalar_lea.vmem (%p188_p7), %s1109_s19, 16 }
  0x97   : > { %619 = vmatpush3.bf16.msk.msra.mxu1 (%p188_p7), %vm618_vm6, %v617_v30  ;;  %s470_s10 = scalar_lea.sflag (%p188_p7), [#allocation11], %s1174_s9  ;;  %p802_p9 = scmp.ne.s32.totalorder (%p188_p7), %s1109_s19, %s801_s17 }
  0x98   : > { %607 = vmatprep.subr.mxu1 (%p188_p7), %v900_v10  ;;  %p1175_p8 = scmp.ne.s32.totalorder (%p188_p7), %s1165_s20, 0  ;;  %s903_s14 = smov (%p188_p7), [#allocation12]  }
  0x99   : > { %s805_s22 = sshll.u32 (%p188_p7), %s903_s14, 4  ;;  %s806_s22 = int_to_ptr.vmem [resolvable:$false] %s805_s22 }
  0x9a   : > { %208 = vadd.xlane.f32.xlu0 %v207_v5  ;;  %p803_p13 = pnand %p802_p9, %p1175_p8  ;;  %s807_s29 = scalar_lea.vmem %s806_s22, 32 }
  0x9b   : > { %p808_p3 = scmp.lt.s32.totalorder %s1109_s19, %s806_s22  ;;  %p809_p4 = scmp.lt.s32.totalorder %s807_s29, %s801_s17 }
  0x9c   : > { %p804_p0 = pneg %p803_p13 }
  0x9d   : > { %p810_p6 = por %p809_p4, %p808_p3 }
  0x9f   : > { %p811_p10 = pnand %p810_p6, %p804_p0 }
 0x123   : > { %v203_v11 = vpop.xlane.xlu0 %202 }
 0x124   : > { %695 = vrsqrt.f32 %v203_v11 }
 0x127   : > { %v209_v12 = vpop.xlane.xlu0 %208 }
 0x128   : > { %697 = vrsqrt.f32 %v209_v12 }
 0x12e   : > { %v696_v13 = vpop.eup %695 }
 0x12f   : > { %v205_v14 = vmin.f32 %v696_v13, 1.0 }
 0x131   : > { %v212_v17 = vmul.f32 %v205_v14, %v197_v0 }
 0x132   : > { %v698_v15 = vpop.eup %697 }
 0x133   : > { %v211_v16 = vmin.f32 %v698_v15, 1.0 }
 0x135   : > { %v213_v18 = vmul.f32 %v211_v16, %v198_v1 }
 0x137   : > { %v214_v19 = vmul.f32 %v213_v18, %v212_v17 }
 0x139   : > { %598 = vmatmul.mubr.msk.f32.vlgmr.msra.gmra.mrb[0].mxu0 %vm200_vm0, %v214_v19 }
 0x20c   : > { %v292_v20 = vpop.f32.mrb[0].mxu0 }
 0x20d   : > { %v599_v21 = vpop.f32.mrb[1].mxu0  ;;  %v297_v22 = vsel %vm296_vm3, %v292_v20, -inf }
 0x20e   : > { %298 = vmax.xlane.f32.xlu1 %v297_v22 }
 0x29b   : > { %v299_v23 = vpop.xlane.xlu1 %298 }
 0x29c   : > { %v300_v24 = vsub.f32 %v292_v20, %v299_v23 }
 0x29e   : > { %v301_v25 = vmul.f32 1.442695, %v300_v24 }
 0x2a0   : > { %699 = vpow2.f32 %v301_v25 }
 0x2aa   : > { %v700_v26 = vpop.eup %699 }
 0x2ab   : > { %v303_v27 = vsel %vm296_vm3, %v700_v26, 0.0 }
 0x2ac   : > { %304 = vadd.xlane.f32.xlu1 %v303_v27 }
 0x339   : > { %v305_v31 = vpop.xlane.xlu1 %304 }
 0x33a   : > { %701 = vrcp.f32 %v305_v31 }
 0x344   : > { %v702_v32 = vpop.eup %701 }
 0x345   : > { %v307_v33 = vmul.f32 %v702_v32, %v700_v26 }
 0x347   : > { %605 = vmatmul.mubr.msk.f32.vlgmr.msra.gmra.mrb[0].mxu1 %vm296_vm3, %v307_v33 }
 0x348   : > { %609 = vmatprep.mubr.msk.f32.mxu1 %vm899_vm2, %v900_v10 }
 0x41a   : > { %v383_v34 = vpop.f32.mrb[0].mxu1 }
 0x41b   : > { %v387_v35 = vadd.f32 %v383_v34, %v212_v17  ;;  %v606_v36 = vpop.f32.mrb[1].mxu1 }
 0x41d   : > { %v388_v37 = vsub.f32 %v387_v35, %v213_v18 }
 0x41f   : > { %v389_v38 = vmul.f32 %v388_v37, %v388_v37 }
 0x421   : > { %608 = vmatpush3.xpose.msk.msra.mxu1 %vm200_vm0, %v389_v38 }
 0x424   : > { %610 = vmatmul.mubr.msk.f32.vlgmr.msra.gmra.mrb[2].mxu1 %vm200_vm0, %v902_v39 }
 0x4f7   : > { %v462_v40 = vpop.f32.mrb[2].mxu1 }
 0x4f8   : > { %v466_v41 = vsub.f32 0.0, %v462_v40  ;;  %v611_v42 = vpop.f32.mrb[3].mxu1 }
 0x4fa   : > { %468 = vst.msk [vmem:[%s1041_s25] sm:$0x1] %vm467_vm7, %v466_v41 }
 0x4fb   : > { %814 = shalt.err (!%p811_p10)
}
 0x4fc   : > { %s815_s25 = scalar_lea.hbm %s1107_s8, 16  ;;  %s819_s24 = scalar_lea.hbm %s1157_s6, 48 }
 0x4fd   : > { %p816_p11 = scmp.ne.s32.totalorder %s1107_s8, %s815_s25  ;;  %p820_p2 = scmp.lt.u32.totalorder %s1107_s8, %s1157_s6 }
 0x4fe   : > { %p821_p5 = scmp.lt.u32.totalorder %s819_s24, %s815_s25  ;;  %p823_p9 = scmp.lt.u32.totalorder %s815_s25, %s1107_s8 }
 0x4ff   : > { %p817_p12 = pnand %p816_p11, %p1175_p8 }
 0x500   : > { %p822_p7 = por %p821_p5, %p820_p2 }
 0x501   : > { %p818_p1 = pneg %p817_p12 }
 0x502   : > { %p824_p13 = por %p823_p9, %p822_p7 }
 0x504   : > { %p825_p0 = pnand %p824_p13, %p818_p1 }
 0x506   : > { %828 = shalt.err (!%p825_p0)
}
 0x507   : > { %624 = dma.vmem_to_hbm [thread:$0]  (%p1175_p8), %s1109_s19, 16, %s1107_s8, %s470_s10  }
 0x508 PF: > { %p636_p3 = scmp.ge.s32.totalorder %s881_s13, 2  ;;  %s494_s7 = sand.u32 1, %s869_s0  }
 0x509   : > { %p1176_p4 = scmp.ne.s32.totalorder %s1166_s21, 0  ;;  %s495_s27 = scalar_lea.sflag [#allocation11], %s494_s7 }
 0x50b   : > { %p631_p6 = pnand %p636_p3, %p1176_p4 }
 0x50d   : > { %864 = dma.done.wait (!%p631_p6), %s495_s27, 16  }
 0x50e   : > { %866 = vsyncadd (!%p631_p6), %s495_s27, 4294967280  ;;  %s1177_s30 = sld [smem:[#allocation24_spill]]  ;;  %p25_p10 = scmp.ge.s32.totalorder %s979_s16, 5  }
 0x50f   : > { %s1178_s0 = smov %s873_s12  ;;  %s1179_s12 = smov %s877_s1 }
 0x510   : > { %s1181_s13 = smov %s979_s16  ;;  %27 = sbr.rel (!%p25_p10) target bundleno = 26 (0x1a), region = 113 }
 0x514   : > { %s1180_s1 = smov %s1177_s30 }
 0x517   :  { %499 = vsyncpa [#allocation10], 1 }
 0x518   :  { %501 = vsyncpa [#allocation10 + $0x1], 1 }
 0x519   :  { %502 = vsyncpa [#allocation11], 1 }
 0x51a   :  { %504 = vsyncpa [#allocation11 + $0x1], 1 }
 0x51b   :  { %505 = vsyncmov [#allocation4] }
 0x51e   :  { %s506_s13 = vpop.sfrf %505 }
 0x51f   :  { %p583_p8 = scmp.ne.s32.totalorder %s506_s13, 0 }
 0x521   :  { %510 = shalt.err (%p583_p8)  }
 0x522   :  { %511 = vsyncmov [#allocation5] }
 0x525   :  { %s512_s20 = vpop.sfrf %511 }
 0x526   :  { %p584_p11 = scmp.ne.s32.totalorder %s512_s20, 0 }
 0x528   :  { %516 = shalt.err (%p584_p11)  }

</bundles_post_ra>
